<compile_context>
chip_gen: v6e
topology: v6e:2x2x1
jax: 0.10.0
libtpu: 0.0.40
codegen_flags: <defaults>
</compile_context>

<pallas_src>
import jax
import jax.numpy as jnp
from jax.experimental import pallas as pl
from jax.experimental.pallas import tpu as pltpu


def _frelu_kernel(x_ref, w_ref, b_ref, o_ref):
    # x_ref : (NB, H+2, W+2, CB)  halo-padded activation tile, channels on lanes
    # w_ref : (3, 3, CB)          BN-folded depthwise taps (per-channel vectors)
    # b_ref : (1, CB)             BN-folded bias
    # o_ref : (NB, H, W, CB)
    NB, H, W, CB = o_ref.shape

    w = w_ref[...]                                   # (3, 3, CB) compute dtype
    b = b_ref[0]                                     # (CB,)

    # Seed the accumulator with the bias: saves a full-plane zero pass and the
    # separate `+ b` pass at the end.
    acc = jnp.broadcast_to(b, (NB, H, W, CB))

    # 3x3 depthwise conv: 9 shifted multiply-accumulates read directly from the
    # halo-padded block (no scratch build); per-channel tap weights broadcast
    # along lanes, shifts land on leading/sublane dims only.
    # TODO(synk): the dw=1/2 slices are sublane-misaligned; a pltpu.roll(+mask)
    # formulation would move that realign work onto the idle XLU slot.
    for dh in range(3):
        for dw in range(3):
            acc = acc + x_ref[:, dh:dh + H, dw:dw + W, :] * w[dh, dw]

    # out = max(x, BN(conv(x)))
    x_c = x_ref[:, 1:H + 1, 1:W + 1, :]
    o_ref[...] = jnp.maximum(x_c.astype(acc.dtype), acc).astype(o_ref.dtype)


def frelu_pallas(x, w_eff, b_eff):
    """x: (N, C, H, W); w_eff: (C, 3, 3); b_eff: (C,). Returns (N, C, H, W)."""
    N, C, H, W = x.shape
    Cp = ((C + 127) // 128) * 128

    # bf16 activations compute bf16-natively (v6e/v7x VPU); f32 stays f32.
    cdt = jnp.bfloat16 if x.dtype == jnp.bfloat16 else jnp.float32

    # Layout plumbing in glue: NCHW -> NHWC (channels on lanes). The 1-pixel
    # conv halo and the lane padding are added in the same HBM copy, so the
    # kernel never builds a padded plane itself.
    # TODO(synk): for C << 128 the lane padding wastes HBM bandwidth; a
    # (N, H, W/k, k*C) lane-remap (dw shift -> lane roll) would remove it but
    # is not implemented.
    x_nhwc = jnp.transpose(x, (0, 2, 3, 1))                          # (N,H,W,C)
    x_nhwc = jnp.pad(x_nhwc, ((0, 0), (1, 1), (1, 1), (0, Cp - C)))  # halo+lanes

    w_l = jnp.transpose(w_eff, (1, 2, 0)).astype(cdt)                # (3,3,C)
    b_l = b_eff[None, :].astype(cdt)                                 # (1,C)
    w_l = jnp.pad(w_l, ((0, 0), (0, 0), (0, Cp - C)))
    b_l = jnp.pad(b_l, ((0, 0), (0, Cp - C)))

    # --- block sizing: budget double-buffered in+out blocks against VMEM -----
    itemsize = jnp.dtype(x.dtype).itemsize

    def block_bytes(nb, cb):
        # double-buffered input block + double-buffered output block
        return 2 * nb * cb * ((H + 2) * (W + 2) + H * W) * itemsize

    BUDGET = 8 << 20  # fits v5e's 16 MiB scoped-VMEM default with headroom

    CB = Cp if block_bytes(1, Cp) <= BUDGET else 128
    # TODO(synk): planes so large that even (1, H+2, W+2, 128) blows the budget
    # would need spatial H tiling with a 1-row halo; not implemented.

    # Block over multiple batch images when planes are small (amortize the
    # ~0.35 us per-step overhead), largest divisor of N that fits the budget.
    NB = 1
    for cand in range(N, 0, -1):
        if N % cand == 0 and block_bytes(cand, CB) <= BUDGET:
            NB = cand
            break
    # Keep >= 2 grid steps when possible so both v7x TensorCores get work.
    if (Cp // CB) * (N // NB) < 2 and NB > 1:
        NB = max(d for d in range(1, NB) if N % d == 0)

    needed = block_bytes(NB, CB) + 2 * 10 * CB * jnp.dtype(cdt).itemsize + (1 << 20)
    vmem_limit = None
    if needed > (12 << 20):
        vmem_limit = int(min(max(needed + (4 << 20), 32 << 20), 60 << 20))

    out = pl.pallas_call(
        _frelu_kernel,
        out_shape=jax.ShapeDtypeStruct((N, H, W, Cp), x.dtype),
        grid_spec=pltpu.PrefetchScalarGridSpec(
            num_scalar_prefetch=0,
            # batch innermost -> weight/bias block index constant across it
            grid=(Cp // CB, N // NB),
            in_specs=[
                pl.BlockSpec((NB, H + 2, W + 2, CB), lambda cb, n: (n, 0, 0, cb)),
                pl.BlockSpec((3, 3, CB), lambda cb, n: (0, 0, cb)),
                pl.BlockSpec((1, CB), lambda cb, n: (0, cb)),
            ],
            out_specs=pl.BlockSpec((NB, H, W, CB), lambda cb, n: (n, 0, 0, cb)),
        ),
        compiler_params=pltpu.CompilerParams(
            dimension_semantics=("parallel", "parallel"),
            vmem_limit_bytes=vmem_limit),
    )(x_nhwc, w_l, b_l)

    # Drop channel padding, back to NCHW.
    return jnp.transpose(out[:, :, :, :C], (0, 3, 1, 2))


def frelu_reference(x, w_eff, b_eff):
    """Pure-JAX reference (same BN-folded params), NCHW."""
    N, C, H, W = x.shape
    xp = jnp.pad(x, ((0, 0), (0, 0), (1, 1), (1, 1)))
    acc = jnp.zeros_like(x)
    for dh in range(3):
        for dw in range(3):
            acc = acc + xp[:, :, dh:dh + H, dw:dw + W] * w_eff[None, :, dh, dw, None, None]
    y = acc + b_eff[None, :, None, None]
    return jnp.maximum(x, y)


if __name__ == "__main__":
    key = jax.random.PRNGKey(0)
    k_x, k_w, k_b, k_g, k_beta, k_m, k_v = jax.random.split(key, 7)

    N, C, H, W = 2, 4, 16, 16
    x = jax.random.normal(k_x, (N, C, H, W), jnp.float32)

    # Parameters matching FReLU.__init__ with c1=C, k=3:
    # depthwise conv weight (C,1,3,3), conv bias (C,), BN gamma/beta/mean/var (C,)
    conv_w = jax.random.normal(k_w, (C, 1, 3, 3), jnp.float32) * 0.2
    conv_b = jax.random.normal(k_b, (C,), jnp.float32) * 0.1
    gamma = 1.0 + 0.1 * jax.random.normal(k_g, (C,), jnp.float32)
    beta = 0.1 * jax.random.normal(k_beta, (C,), jnp.float32)
    run_mean = 0.1 * jax.random.normal(k_m, (C,), jnp.float32)
    run_var = jnp.abs(jax.random.normal(k_v, (C,), jnp.float32)) + 0.5
    eps = 1e-5
    # TODO(synk): BatchNorm is applied in inference mode (running stats); the
    # training-mode batch-statistics path is not implemented.

    # Fold BN (inference) into the depthwise conv (plain-JAX glue).
    scale = gamma / jnp.sqrt(run_var + eps)                       # (C,)
    w_eff = conv_w[:, 0, :, :] * scale[:, None, None]             # (C, 3, 3)
    b_eff = conv_b * scale + beta - run_mean * scale              # (C,)

    out = frelu_pallas(x, w_eff, b_eff)
    out = jax.block_until_ready(out)

    ref = frelu_reference(x, w_eff, b_eff)
    assert jnp.allclose(out, ref, atol=1e-5, rtol=1e-5), "mismatch vs reference"

    print("KERNEL_OK")
</pallas_src>

<mosaic_0001>
module attributes {stable_mosaic.version = 11 : i64} {
  func.func @_frelu_kernel(%arg0: i32, %arg1: i32, %arg2: memref<1x18x18x128xf32, #tpu.memory_space<vmem>>, %arg3: memref<3x3x128xf32, #tpu.memory_space<vmem>>, %arg4: memref<1x128xf32, #tpu.memory_space<vmem>>, %arg5: memref<1x16x16x128xf32, #tpu.memory_space<vmem>>) attributes {dimension_semantics = [#tpu.dimension_semantics<parallel>, #tpu.dimension_semantics<parallel>], iteration_bounds = array<i64: 1, 2>, scalar_prefetch = 0 : i64, scratch_operands = 0 : i64, tpu.core_type = #tpu.core_type<tc>, window_params = [{transform_indices = @transform_0, window_bounds = array<i64: 1, 18, 18, 128>}, {transform_indices = @transform_1, window_bounds = array<i64: 3, 3, 128>}, {transform_indices = @transform_2, window_bounds = array<i64: 1, 128>}, {transform_indices = @transform_3, window_bounds = array<i64: 1, 16, 16, 128>}]} {
    %c0 = arith.constant 0 : index
    %c0_0 = arith.constant 0 : index
    %c0_1 = arith.constant 0 : index
    %0 = vector.load %arg3[%c0, %c0_0, %c0_1] : memref<3x3x128xf32, #tpu.memory_space<vmem>>, vector<3x3x128xf32>
    %c0_2 = arith.constant 0 : index
    %c0_3 = arith.constant 0 : index
    %1 = vector.load %arg4[%c0_2, %c0_3] : memref<1x128xf32, #tpu.memory_space<vmem>>, vector<1x128xf32>
    %2 = vector.shape_cast %1 : vector<1x128xf32> to vector<128xf32>
    %3 = vector.shape_cast %2 : vector<128xf32> to vector<1x1x1x128xf32>
    %4 = vector.broadcast %3 : vector<1x1x1x128xf32> to vector<1x16x16x128xf32>
    %c0_4 = arith.constant 0 : index
    %c0_5 = arith.constant 0 : index
    %c0_6 = arith.constant 0 : index
    %c0_7 = arith.constant 0 : index
    %5 = vector.load %arg2[%c0_4, %c0_5, %c0_6, %c0_7] : memref<1x18x18x128xf32, #tpu.memory_space<vmem>>, vector<1x16x16x128xf32>
    %6 = vector.extract_strided_slice %0 {offsets = [0, 0, 0], sizes = [1, 1, 128], strides = [1, 1, 1]} : vector<3x3x128xf32> to vector<1x1x128xf32>
    %7 = vector.shape_cast %6 : vector<1x1x128xf32> to vector<128xf32>
    %8 = vector.shape_cast %7 : vector<128xf32> to vector<1x1x1x128xf32>
    %9 = vector.broadcast %8 : vector<1x1x1x128xf32> to vector<1x16x16x128xf32>
    %10 = arith.mulf %5, %9 : vector<1x16x16x128xf32>
    %11 = arith.addf %4, %10 : vector<1x16x16x128xf32>
    %c0_8 = arith.constant 0 : index
    %c0_9 = arith.constant 0 : index
    %c1 = arith.constant 1 : index
    %c0_10 = arith.constant 0 : index
    %12 = vector.load %arg2[%c0_8, %c0_9, %c1, %c0_10] : memref<1x18x18x128xf32, #tpu.memory_space<vmem>>, vector<1x16x16x128xf32>
    %13 = vector.extract_strided_slice %0 {offsets = [0, 1, 0], sizes = [1, 1, 128], strides = [1, 1, 1]} : vector<3x3x128xf32> to vector<1x1x128xf32>
    %14 = vector.shape_cast %13 : vector<1x1x128xf32> to vector<128xf32>
    %15 = vector.shape_cast %14 : vector<128xf32> to vector<1x1x1x128xf32>
    %16 = vector.broadcast %15 : vector<1x1x1x128xf32> to vector<1x16x16x128xf32>
    %17 = arith.mulf %12, %16 : vector<1x16x16x128xf32>
    %18 = arith.addf %11, %17 : vector<1x16x16x128xf32>
    %c0_11 = arith.constant 0 : index
    %c0_12 = arith.constant 0 : index
    %c2 = arith.constant 2 : index
    %c0_13 = arith.constant 0 : index
    %19 = vector.load %arg2[%c0_11, %c0_12, %c2, %c0_13] : memref<1x18x18x128xf32, #tpu.memory_space<vmem>>, vector<1x16x16x128xf32>
    %20 = vector.extract_strided_slice %0 {offsets = [0, 2, 0], sizes = [1, 1, 128], strides = [1, 1, 1]} : vector<3x3x128xf32> to vector<1x1x128xf32>
    %21 = vector.shape_cast %20 : vector<1x1x128xf32> to vector<128xf32>
    %22 = vector.shape_cast %21 : vector<128xf32> to vector<1x1x1x128xf32>
    %23 = vector.broadcast %22 : vector<1x1x1x128xf32> to vector<1x16x16x128xf32>
    %24 = arith.mulf %19, %23 : vector<1x16x16x128xf32>
    %25 = arith.addf %18, %24 : vector<1x16x16x128xf32>
    %c0_14 = arith.constant 0 : index
    %c1_15 = arith.constant 1 : index
    %c0_16 = arith.constant 0 : index
    %c0_17 = arith.constant 0 : index
    %26 = vector.load %arg2[%c0_14, %c1_15, %c0_16, %c0_17] : memref<1x18x18x128xf32, #tpu.memory_space<vmem>>, vector<1x16x16x128xf32>
    %27 = vector.extract_strided_slice %0 {offsets = [1, 0, 0], sizes = [1, 1, 128], strides = [1, 1, 1]} : vector<3x3x128xf32> to vector<1x1x128xf32>
    %28 = vector.shape_cast %27 : vector<1x1x128xf32> to vector<128xf32>
    %29 = vector.shape_cast %28 : vector<128xf32> to vector<1x1x1x128xf32>
    %30 = vector.broadcast %29 : vector<1x1x1x128xf32> to vector<1x16x16x128xf32>
    %31 = arith.mulf %26, %30 : vector<1x16x16x128xf32>
    %32 = arith.addf %25, %31 : vector<1x16x16x128xf32>
    %c0_18 = arith.constant 0 : index
    %c1_19 = arith.constant 1 : index
    %c1_20 = arith.constant 1 : index
    %c0_21 = arith.constant 0 : index
    %33 = vector.load %arg2[%c0_18, %c1_19, %c1_20, %c0_21] : memref<1x18x18x128xf32, #tpu.memory_space<vmem>>, vector<1x16x16x128xf32>
    %34 = vector.extract_strided_slice %0 {offsets = [1, 1, 0], sizes = [1, 1, 128], strides = [1, 1, 1]} : vector<3x3x128xf32> to vector<1x1x128xf32>
    %35 = vector.shape_cast %34 : vector<1x1x128xf32> to vector<128xf32>
    %36 = vector.shape_cast %35 : vector<128xf32> to vector<1x1x1x128xf32>
    %37 = vector.broadcast %36 : vector<1x1x1x128xf32> to vector<1x16x16x128xf32>
    %38 = arith.mulf %33, %37 : vector<1x16x16x128xf32>
    %39 = arith.addf %32, %38 : vector<1x16x16x128xf32>
    %c0_22 = arith.constant 0 : index
    %c1_23 = arith.constant 1 : index
    %c2_24 = arith.constant 2 : index
    %c0_25 = arith.constant 0 : index
    %40 = vector.load %arg2[%c0_22, %c1_23, %c2_24, %c0_25] : memref<1x18x18x128xf32, #tpu.memory_space<vmem>>, vector<1x16x16x128xf32>
    %41 = vector.extract_strided_slice %0 {offsets = [1, 2, 0], sizes = [1, 1, 128], strides = [1, 1, 1]} : vector<3x3x128xf32> to vector<1x1x128xf32>
    %42 = vector.shape_cast %41 : vector<1x1x128xf32> to vector<128xf32>
    %43 = vector.shape_cast %42 : vector<128xf32> to vector<1x1x1x128xf32>
    %44 = vector.broadcast %43 : vector<1x1x1x128xf32> to vector<1x16x16x128xf32>
    %45 = arith.mulf %40, %44 : vector<1x16x16x128xf32>
    %46 = arith.addf %39, %45 : vector<1x16x16x128xf32>
    %c0_26 = arith.constant 0 : index
    %c2_27 = arith.constant 2 : index
    %c0_28 = arith.constant 0 : index
    %c0_29 = arith.constant 0 : index
    %47 = vector.load %arg2[%c0_26, %c2_27, %c0_28, %c0_29] : memref<1x18x18x128xf32, #tpu.memory_space<vmem>>, vector<1x16x16x128xf32>
    %48 = vector.extract_strided_slice %0 {offsets = [2, 0, 0], sizes = [1, 1, 128], strides = [1, 1, 1]} : vector<3x3x128xf32> to vector<1x1x128xf32>
    %49 = vector.shape_cast %48 : vector<1x1x128xf32> to vector<128xf32>
    %50 = vector.shape_cast %49 : vector<128xf32> to vector<1x1x1x128xf32>
    %51 = vector.broadcast %50 : vector<1x1x1x128xf32> to vector<1x16x16x128xf32>
    %52 = arith.mulf %47, %51 : vector<1x16x16x128xf32>
    %53 = arith.addf %46, %52 : vector<1x16x16x128xf32>
    %c0_30 = arith.constant 0 : index
    %c2_31 = arith.constant 2 : index
    %c1_32 = arith.constant 1 : index
    %c0_33 = arith.constant 0 : index
    %54 = vector.load %arg2[%c0_30, %c2_31, %c1_32, %c0_33] : memref<1x18x18x128xf32, #tpu.memory_space<vmem>>, vector<1x16x16x128xf32>
    %55 = vector.extract_strided_slice %0 {offsets = [2, 1, 0], sizes = [1, 1, 128], strides = [1, 1, 1]} : vector<3x3x128xf32> to vector<1x1x128xf32>
    %56 = vector.shape_cast %55 : vector<1x1x128xf32> to vector<128xf32>
    %57 = vector.shape_cast %56 : vector<128xf32> to vector<1x1x1x128xf32>
    %58 = vector.broadcast %57 : vector<1x1x1x128xf32> to vector<1x16x16x128xf32>
    %59 = arith.mulf %54, %58 : vector<1x16x16x128xf32>
    %60 = arith.addf %53, %59 : vector<1x16x16x128xf32>
    %c0_34 = arith.constant 0 : index
    %c2_35 = arith.constant 2 : index
    %c2_36 = arith.constant 2 : index
    %c0_37 = arith.constant 0 : index
    %61 = vector.load %arg2[%c0_34, %c2_35, %c2_36, %c0_37] : memref<1x18x18x128xf32, #tpu.memory_space<vmem>>, vector<1x16x16x128xf32>
    %62 = vector.extract_strided_slice %0 {offsets = [2, 2, 0], sizes = [1, 1, 128], strides = [1, 1, 1]} : vector<3x3x128xf32> to vector<1x1x128xf32>
    %63 = vector.shape_cast %62 : vector<1x1x128xf32> to vector<128xf32>
    %64 = vector.shape_cast %63 : vector<128xf32> to vector<1x1x1x128xf32>
    %65 = vector.broadcast %64 : vector<1x1x1x128xf32> to vector<1x16x16x128xf32>
    %66 = arith.mulf %61, %65 : vector<1x16x16x128xf32>
    %67 = arith.addf %60, %66 : vector<1x16x16x128xf32>
    %c0_38 = arith.constant 0 : index
    %c1_39 = arith.constant 1 : index
    %c1_40 = arith.constant 1 : index
    %c0_41 = arith.constant 0 : index
    %68 = vector.load %arg2[%c0_38, %c1_39, %c1_40, %c0_41] : memref<1x18x18x128xf32, #tpu.memory_space<vmem>>, vector<1x16x16x128xf32>
    %69 = arith.maximumf %68, %67 : vector<1x16x16x128xf32>
    %c0_42 = arith.constant 0 : index
    %c0_43 = arith.constant 0 : index
    %c0_44 = arith.constant 0 : index
    %c0_45 = arith.constant 0 : index
    %70 = vector.load %arg5[%c0_42, %c0_43, %c0_44, %c0_45] : memref<1x16x16x128xf32, #tpu.memory_space<vmem>>, vector<1x16x16x128xf32>
    tpu.vector_store %arg5[%c0_42, %c0_43, %c0_44, %c0_45], %69 {strides = array<i32>} : memref<1x16x16x128xf32, #tpu.memory_space<vmem>>, vector<1x16x16x128xf32>,
    return
  }
  func.func @transform_0(%arg0: i32, %arg1: i32) -> (i32, i32, i32, i32) {
    %c0_i32 = arith.constant 0 : i32
    %c0_i32_0 = arith.constant 0 : i32
    %c0_i32_1 = arith.constant 0 : i32
    return %arg1, %c0_i32, %c0_i32_0, %arg0 : i32, i32, i32, i32
  }
  func.func @transform_1(%arg0: i32, %arg1: i32) -> (i32, i32, i32) {
    %c0_i32 = arith.constant 0 : i32
    %c0_i32_0 = arith.constant 0 : i32
    %c0_i32_1 = arith.constant 0 : i32
    return %c0_i32, %c0_i32_0, %arg0 : i32, i32, i32
  }
  func.func @transform_2(%arg0: i32, %arg1: i32) -> (i32, i32) {
    %c0_i32 = arith.constant 0 : i32
    %c0_i32_0 = arith.constant 0 : i32
    return %c0_i32, %arg0 : i32, i32
  }
  func.func @transform_3(%arg0: i32, %arg1: i32) -> (i32, i32, i32, i32) {
    %c0_i32 = arith.constant 0 : i32
    %c0_i32_0 = arith.constant 0 : i32
    %c0_i32_1 = arith.constant 0 : i32
    return %arg1, %c0_i32, %c0_i32_0, %arg0 : i32, i32, i32, i32
  }
}

</mosaic_0001>

<bundles_post_ra>
// kernel: tpu_custom_call.1
= control target key start
LH: loop header
LB: loop body
LE: loop exit
PB: predicated region body
PF: predicated region fallthrough
CT: control target
= control target key end

     0   :  { %8 = vsyncpa [#allocation3], 0  ;;  %s2515_s0 = inlined_call_operand.vmem [shape: f32[2,18,18,128], index: 0, kind: input, shape index: {}]   ;;  %s2516_s1 = inlined_call_operand.vmem [shape: f32[3,3,128], index: 1, kind: input, shape index: {}]   ;;  %s2517_s2 = inlined_call_operand.vmem [shape: f32[1,128], index: 2, kind: input, shape index: {}]   ;;  %s2518_s3 = inlined_call_operand.hbm [shape: f32[2,16,16,128], index: 3, kind: output, shape index: {}]  }
   0x1   :  { %10 = vsyncpa [#allocation3 + $0x1], 0  ;;  %s1689_s12 = smov 0   ;;  %s1691_s13 = smov 0  }
   0x2   :  { %s1693_s14 = smov 0   ;;  %s1695_s15 = smov 0  }
   0x3   :  { %s1697_s16 = smov 0   ;;  %s1699_s17 = smov 0  }
   0x4 LB: > { %s1321_s18 = sadd.s32 4294967295, %s1664_s17   ;;  %s1322_s19 = sadd.s32 4294967294, %s1664_s17   ;;  %s1664_s17 = sphi %s1699_s17, %s16_s17   ;;  %s1660_s16 = sphi %s1697_s16, %s2525_s16   ;;  %s1656_s15 = sphi %s1695_s15, %s2524_s15   ;;  %s1652_s14 = sphi %s1693_s14, %s2523_s14   ;;  %s1648_s13 = sphi %s1691_s13, %s2522_s13   ;;  %s1644_s12 = sphi %s1689_s12, %s2521_s12  }
   0x5   : > { %s25_s20 = sadd.s32 1, %s1660_s16  ;;  %s117_s21 = sadd.s32 1, %s1652_s14 }
   0x6   : > { %p26_p0 = scmp.ge.s32.totalorder %s25_s20, 2  ;;  %p127_p1 = scmp.ne.s32.totalorder %s1652_s14, %s1648_s13 }
   0x7   : > { %p128_p2 = scmp.eq.s32.totalorder %s1321_s18, 1  ;;  %p133_p3 = scmp.ne.s32.totalorder %s1648_s13, %s1644_s12 }
   0x8   : > { %s2527_s20 = smov (%p26_p0, %s25_s20), 0  ;;  %p134_p5 = scmp.eq.s32.totalorder %s1322_s19, 1 }
   0x9   : > { %p1729_p4 = por %p128_p2, %p127_p1  ;;  %s112_s23 = ssub.s32 %s1660_s16, %s2527_s20 }
   0xa   : > { %p1327_p6 = scmp.ge.s32.totalorder %s1664_s17, 1  ;;  %p115_p7 = scmp.eq.s32.totalorder %s112_s23, 0 }
   0xb   : > { %p1736_p8 = por %p134_p5, %p133_p3  ;;  %p176_p9 = scmp.lt.s32.totalorder %s1664_s17, 3 }
   0xc   : > { %s1742_s25 = scalar_select %p115_p7, %s1652_s14, %s117_s21  }
   0xd   : > { %p177_p10 = pnand %p1327_p6, %p176_p9 }
   0xe   : > { %p210_p11 = scmp.lt.s32.totalorder (!%p177_p10), %s1656_s15, 1  ;;  %s207_s18 = sand.u32 (!%p177_p10), 1, %s1648_s13  }
   0xf   : > { %180 = sbr.rel (%p177_p10) target bundleno = 205 (0xcd), region = 32  ;;  %s1328_s19 = sshll.u32 (!%p177_p10), %s207_s18, 8 }
  0x10   : > { %s1900_s21 = scalar_lea.vmem (!%p177_p10), [#allocation2], %s1328_s19  ;;  %s1528_s27 = sshll.u32 (!%p177_p10), %s1656_s15, 12 }
  0x11   : > { %s1216_s28 = sshll.u32 (!%p177_p10), %s1900_s21, 4  ;;  %s2470_s5 = scalar_lea.sflag (!%p177_p10), [#allocation3], %s207_s18  ;;  %s2465_s28 = int_to_ptr.vmem [resolvable:$true] %s1216_s28 }
  0x12   : > { %s1588_s6 = scalar_lea.vmem (!%p177_p10), %s2465_s28, 4096 }
  0x13   : > { %p1589_p12 = scmp.ne.s32.totalorder (!%p177_p10), %s2465_s28, %s1588_s6 }
  0x14   : > { %v267_v0 = vlaneseq  ;;  %s211_s26 = scalar_select %p210_p11, %s1656_s15, 1  ;;  %v225_v2 = vld [vmem:[%s2516_s1] sm:$0x7]  ;;  %v226_v3 = vld [vmem:[%s2516_s1 + $0x4] sm:$0x7] }
  0x15   : > { %v227_v7 = vld [vmem:[%s2516_s1 + $0x8] sm:$0x7]  ;;  %v1767_v10 = vld [vmem:[%s2517_s2] ss:$0 sm:$0xff]  ;;  %p1590_p13 = pnand %p1589_p12, %p1729_p4  ;;  %s1666_s15 = smov [#allocation2]  }
  0x16   : > { %v268_v1 = vshrl.u32 %v267_v0, 7  ;;  %s1529_s4 = smul.u32 432, %s211_s26  ;;  %s1592_s7 = sshll.u32 %s1666_s15, 4  ;;  %s1593_s7 = int_to_ptr.vmem [resolvable:$false] %s1592_s7 }
  0x17   : > { %p1591_p0 = pneg %p1590_p13  ;;  %s1594_s8 = scalar_lea.vmem %s1593_s7, 8192 }
  0x18   : > { %v269_v4 = vsub.s32 0, %v268_v1  ;;  %v369_v5 = vsub.s32 1, %v268_v1  ;;  %v469_v6 = vsub.s32 2, %v268_v1  ;;  %s1762_s9 = scalar_lea.vmem %s2515_s0, %s1529_s4  ;;  %s2463_s4 = scalar_lea.hbm %s2518_s3, %s1528_s27 }
  0x19   : > { %v235_v13 = vld [vmem:[%s1762_s9] sm:$0xff]  ;;  %v1331_v20 = vld [vmem:[%s1762_s9 + $0x18] sm:$0xff]  ;;  %v236_v30 = vld [vmem:[%s1762_s9 + $0x8] sm:$0xff]  ;;  %p1595_p1 = scmp.lt.s32.totalorder %s2465_s28, %s1593_s7  ;;  %p1596_p2 = scmp.lt.s32.totalorder %s1594_s8, %s1588_s6 }
  0x1a   : > { %v1755_v8 = vrot.slane %v225_v2, %v269_v4  ;;  %v1757_v9 = vrot.slane %v225_v2, %v369_v5  ;;  %v1769_v11 = vrot.slane %v225_v2, %v469_v6  ;;  %v1771_v12 = vrot.slane %v226_v3, %v269_v4  ;;  %v335_v14 = vld [vmem:[%s1762_s9 + $0x1] sm:$0xff]  ;;  %v1788_v23 = vld [vmem:[%s1762_s9 + $0x19] sm:$0xff]  ;;  %v336_v31 = vld [vmem:[%s1762_s9 + $0x9] sm:$0xff] }
  0x1b   : > { %v435_v15 = vld [vmem:[%s1762_s9 + $0x2] sm:$0xff]  ;;  %v1776_v16 = vrot.slane %v226_v3, %v369_v5  ;;  %v1778_v17 = vrot.slane %v226_v3, %v469_v6  ;;  %v1783_v21 = vrot.slane %v227_v7, %v269_v4  ;;  %v1785_v22 = vrot.slane %v227_v7, %v369_v5  ;;  %v1395_v24 = vld [vmem:[%s1762_s9 + $0x1a] sm:$0xff]  ;;  %v436_v32 = vld [vmem:[%s1762_s9 + $0xa] sm:$0xff]  ;;  %p1597_p3 = por %p1596_p2, %p1595_p1 }
  0x1c   : > { %v271_v18 = vmul.f32 %v1755_v8, %v235_v13  ;;  %v371_v19 = vmul.f32 %v1757_v9, %v335_v14  ;;  %v1791_v25 = vrot.slane %v227_v7, %v469_v6  ;;  %v273_v26 = vmul.f32 %v1331_v20, %v1755_v8  ;;  %v1427_v35 = vld [vmem:[%s1762_s9 + $0x30] sm:$0xff]  ;;  %v1332_v43 = vld [vmem:[%s1762_s9 + $0x20] sm:$0xff]  ;;  %v1428_v53 = vld [vmem:[%s1762_s9 + $0x38] sm:$0xff] }
  0x1d   : > { %v471_v28 = vmul.f32 %v1769_v11, %v435_v15  ;;  %v572_v29 = vmul.f32 %v1331_v20, %v1771_v12  ;;  %v672_v33 = vmul.f32 %v1788_v23, %v1776_v16  ;;  %v772_v34 = vmul.f32 %v1395_v24, %v1778_v17  ;;  %v1805_v36 = vld [vmem:[%s1762_s9 + $0x31] sm:$0xff]  ;;  %v1822_v49 = vld [vmem:[%s1762_s9 + $0x21] sm:$0xff]  ;;  %v1829_v54 = vld [vmem:[%s1762_s9 + $0x39] sm:$0xff]  ;;  %p1598_p5 = pnand %p1597_p3, %p1591_p0 }
  0x1e   : > { %v303_v27 = vadd.f32 %v1767_v10, %v271_v18  ;;  %v272_v37 = vmul.f32 %v1755_v8, %v236_v30  ;;  %v372_v38 = vmul.f32 %v1757_v9, %v336_v31  ;;  %v873_v40 = vmul.f32 %v1427_v35, %v1783_v21  ;;  %v1491_v42 = vld [vmem:[%s1762_s9 + $0x32] sm:$0xff]  ;;  %v1396_v52 = vld [vmem:[%s1762_s9 + $0x22] sm:$0xff]  ;;  %v1492_v61 = vld [vmem:[%s1762_s9 + $0x3a] sm:$0xff] }
  0x1f   : > { %v973_v41 = vmul.f32 %v1805_v36, %v1785_v22  ;;  %v305_v44 = vadd.f32 %v1767_v10, %v273_v26  ;;  %v1816_v45 = vmul.f32 %v1491_v42, %v1791_v25  ;;  %v472_v47 = vmul.f32 %v1769_v11, %v436_v32  ;;  %v1844_v4 = vld [vmem:[%s1762_s9 + $0x48] sm:$0xff] }
  0x20   : > { %v403_v39 = vadd.f32 %v371_v19, %v303_v27  ;;  %v304_v46 = vadd.f32 %v1767_v10, %v272_v37  ;;  %v573_v48 = vmul.f32 %v1332_v43, %v1771_v12  ;;  %v673_v51 = vmul.f32 %v1822_v49, %v1776_v16  ;;  %v1853_v18 = vld [vmem:[%s1762_s9 + $0x49] sm:$0xff] }
  0x21   : > { %v373_v55 = vmul.f32 %v1788_v23, %v1757_v9  ;;  %v473_v56 = vmul.f32 %v1395_v24, %v1769_v11  ;;  %v773_v58 = vmul.f32 %v1396_v52, %v1778_v17  ;;  %v874_v59 = vmul.f32 %v1428_v53, %v1783_v21  ;;  %v1858_v24 = vld [vmem:[%s1762_s9 + $0x4a] sm:$0xff] }
  0x22   : > { %v503_v50 = vadd.f32 %v471_v28, %v403_v39  ;;  %v404_v57 = vadd.f32 %v372_v38, %v304_v46  ;;  %v974_v60 = vmul.f32 %v1829_v54, %v1785_v22  ;;  %v1074_v63 = vmul.f32 %v1492_v61, %v1791_v25 }
  0x23   : > { %v405_v0 = vadd.f32 %v373_v55, %v305_v44  ;;  %v574_v1 = vmul.f32 %v1427_v35, %v1771_v12  ;;  %v674_v3 = vmul.f32 %v1805_v36, %v1776_v16  ;;  %v274_v5 = vmul.f32 %v1332_v43, %v1755_v8 }
  0x24   : > { %v604_v62 = vadd.f32 %v572_v29, %v503_v50  ;;  %v504_v2 = vadd.f32 %v472_v47, %v404_v57  ;;  %v374_v6 = vmul.f32 %v1822_v49, %v1757_v9  ;;  %v774_v14 = vmul.f32 %v1491_v42, %v1778_v17  ;;  %v1876_v50 = vld [vmem:[%s1762_s9 + $0x51] sm:$0xff] }
  0x25   : > { %v505_v13 = vadd.f32 %v473_v56, %v405_v0  ;;  %v875_v15 = vmul.f32 %v1844_v4, %v1783_v21  ;;  %v975_v20 = vmul.f32 %v1853_v18, %v1785_v22  ;;  %v306_v26 = vadd.f32 %v1767_v10, %v274_v5 }
  0x26   : > { %v704_v7 = vadd.f32 %v672_v33, %v604_v62  ;;  %v605_v19 = vadd.f32 %v573_v48, %v504_v2  ;;  %v474_v27 = vmul.f32 %v1396_v52, %v1769_v11  ;;  %v1075_v30 = vmul.f32 %v1858_v24, %v1791_v25  ;;  %v1873_v48 = vld [vmem:[%s1762_s9 + $0x50] sm:$0xff] }
  0x27   : > { %v606_v29 = vadd.f32 %v574_v1, %v505_v13  ;;  %v575_v31 = vmul.f32 %v1428_v53, %v1771_v12  ;;  %v406_v33 = vadd.f32 %v374_v6, %v306_v26  ;;  %v275_v37 = vmul.f32 %v1427_v35, %v1755_v8  ;;  %v1494_v26 = vld [vmem:[%s1762_s9 + $0x52] sm:$0xff] }
  0x28   : > { %v804_v28 = vadd.f32 %v772_v34, %v704_v7  ;;  %v705_v32 = vadd.f32 %v673_v51, %v605_v19  ;;  %v375_v38 = vmul.f32 %v1805_v36, %v1757_v9  ;;  %v675_v34 = vmul.f32 %v1829_v54, %v1776_v16 }
  0x29   : > { %v706_v43 = vadd.f32 %v674_v3, %v606_v29  ;;  %v775_v44 = vmul.f32 %v1492_v61, %v1778_v17  ;;  %v506_v47 = vadd.f32 %v474_v27, %v406_v33  ;;  %v307_v51 = vadd.f32 %v1767_v10, %v275_v37  ;;  %v1910_v33 = vld [vmem:[%s1762_s9 + $0x61] sm:$0xff] }
  0x2a   : > { %v905_v39 = vadd.f32 %v873_v40, %v804_v28  ;;  %v805_v46 = vadd.f32 %v773_v58, %v705_v32  ;;  %v475_v35 = vmul.f32 %v1491_v42, %v1769_v11  ;;  %v876_v55 = vmul.f32 %v1873_v48, %v1783_v21 }
  0x2b   : > { %v806_v40 = vadd.f32 %v774_v14, %v706_v43  ;;  %v976_v56 = vmul.f32 %v1876_v50, %v1785_v22  ;;  %v607_v58 = vadd.f32 %v575_v31, %v506_v47  ;;  %v407_v62 = vadd.f32 %v375_v38, %v307_v51 }
  0x2c   : > { %v1005_v52 = vadd.f32 %v973_v41, %v905_v39  ;;  %v906_v57 = vadd.f32 %v874_v59, %v805_v46  ;;  %v576_v0 = vmul.f32 %v1844_v4, %v1771_v12  ;;  %v676_v41 = vmul.f32 %v1853_v18, %v1776_v16 }
  0x2d   : > { %v907_v42 = vadd.f32 %v875_v15, %v806_v40  ;;  %v276_v2 = vmul.f32 %v1428_v53, %v1755_v8  ;;  %v707_v5 = vadd.f32 %v675_v34, %v607_v58  ;;  %v507_v6 = vadd.f32 %v475_v35, %v407_v62  ;;  %v1495_v34 = vld [vmem:[%s1762_s9 + $0x62] sm:$0xff] }
  0x2e   : > { %v1105_v1 = vadd.f32 %v1816_v45, %v1005_v52  ;;  %v1006_v3 = vadd.f32 %v974_v60, %v906_v57  ;;  %v376_v59 = vmul.f32 %v1829_v54, %v1757_v9  ;;  %v476_v45 = vmul.f32 %v1492_v61, %v1769_v11  ;;  %v1432_v40 = vld [vmem:[%s1762_s9 + $0x68] sm:$0xff] }
  0x2f   : > { %v1007_v13 = vadd.f32 %v975_v20, %v907_v42  ;;  %v308_v14 = vadd.f32 %v1767_v10, %v276_v2  ;;  %v807_v19 = vadd.f32 %v775_v44, %v707_v5  ;;  %v608_v27 = vadd.f32 %v576_v0, %v507_v6  ;;  %v1431_v20 = vld [vmem:[%s1762_s9 + $0x60] sm:$0xff] }
  0x30   : > { %v1137_v7 = vmax.f32 %v1788_v23, %v1105_v1  ;;  %v1106_v15 = vadd.f32 %v1074_v63, %v1006_v3  ;;  %v776_v53 = vmul.f32 %v1858_v24, %v1778_v17  ;;  %v1076_v23 = vmul.f32 %v1494_v26, %v1791_v25 }
  0x31   : > { %v1107_v60 = vadd.f32 %v1075_v30, %v1007_v13  ;;  %v408_v28 = vadd.f32 %v376_v59, %v308_v14  ;;  %v577_v61 = vmul.f32 %v1873_v48, %v1771_v12  ;;  %v908_v29 = vadd.f32 %v876_v55, %v807_v19  ;;  %v1928_v55 = vld [vmem:[%s1762_s9 + $0x69] sm:$0xff]  ;;  %v1949_v14 = vld [vmem:[%s1762_s9 + $0x79] sm:$0xff] }
  0x32   : > { %1169 = vst [vmem:[%s1900_s21] sm:$0xff] %v1137_v7  ;;  %v1138_v63 = vmax.f32 %v1822_v49, %v1106_v15  ;;  %v708_v31 = vadd.f32 %v676_v41, %v608_v27  ;;  %v877_v32 = vmul.f32 %v1431_v20, %v1783_v21  ;;  %v977_v30 = vmul.f32 %v1910_v33, %v1785_v22  ;;  %v1496_v41 = vld [vmem:[%s1762_s9 + $0x6a] sm:$0xff] }
  0x33   : > { %v1139_v37 = vmax.f32 %v1805_v36, %v1107_v60  ;;  %v508_v38 = vadd.f32 %v476_v45, %v408_v28  ;;  %v677_v39 = vmul.f32 %v1876_v50, %v1776_v16  ;;  %v1008_v43 = vadd.f32 %v976_v56, %v908_v29  ;;  %v1497_v28 = vld [vmem:[%s1762_s9 + $0x7a] sm:$0xff] }
  0x34   : > { %1170 = vst [vmem:[%s1900_s21 + $0x8] sm:$0xff] %v1138_v63  ;;  %v808_v49 = vadd.f32 %v776_v53, %v708_v31  ;;  %v277_v44 = vmul.f32 %v1844_v4, %v1755_v8  ;;  %v377_v46 = vmul.f32 %v1853_v18, %v1757_v9  ;;  %v1077_v36 = vmul.f32 %v1495_v34, %v1791_v25 }
  0x35   : > { %1171 = vst [vmem:[%s1900_s21 + $0x10] sm:$0xff] %v1139_v37  ;;  %v609_v47 = vadd.f32 %v577_v61, %v508_v38  ;;  %v777_v51 = vmul.f32 %v1494_v26, %v1778_v17  ;;  %v1108_v35 = vadd.f32 %v1076_v23, %v1008_v43  ;;  %v477_v4 = vmul.f32 %v1858_v24, %v1769_v11 }
  0x36   : > { %v909_v52 = vadd.f32 %v877_v32, %v808_v49  ;;  %v309_v56 = vadd.f32 %v1767_v10, %v277_v44  ;;  %v878_v58 = vmul.f32 %v1432_v40, %v1783_v21  ;;  %v978_v62 = vmul.f32 %v1928_v55, %v1785_v22  ;;  %v1971_v44 = vld [vmem:[%s1762_s9 + $0x81] sm:$0xff] }
  0x37   : > { %v709_v57 = vadd.f32 %v677_v39, %v609_v47  ;;  %v578_v0 = vmul.f32 %v1431_v20, %v1771_v12  ;;  %v1140_v1 = vmax.f32 %v1829_v54, %v1108_v35  ;;  %v278_v3 = vmul.f32 %v1873_v48, %v1755_v8  ;;  %v1433_v54 = vld [vmem:[%s1762_s9 + $0x78] sm:$0xff]  ;;  %v1434_v39 = vld [vmem:[%s1762_s9 + $0x80] sm:$0xff] }
  0x38   : > { %v1009_v42 = vadd.f32 %v977_v30, %v909_v52  ;;  %v409_v2 = vadd.f32 %v377_v46, %v309_v56  ;;  %v1078_v24 = vmul.f32 %v1496_v41, %v1791_v25  ;;  %v678_v6 = vmul.f32 %v1910_v33, %v1776_v16  ;;  %v1498_v56 = vld [vmem:[%s1762_s9 + $0x82] sm:$0xff] }
  0x39   : > { %v809_v5 = vadd.f32 %v777_v51, %v709_v57  ;;  %v378_v59 = vmul.f32 %v1876_v50, %v1757_v9  ;;  %1172 = vst [vmem:[%s1900_s21 + $0x18] sm:$0xff] %v1140_v1  ;;  %v310_v45 = vadd.f32 %v1767_v10, %v278_v3  ;;  %v478_v48 = vmul.f32 %v1494_v26, %v1769_v11  ;;  %v1989_v3 = vld [vmem:[%s1762_s9 + $0x90] sm:$0xff] }
  0x3a   : > { %v1109_v7 = vadd.f32 %v1077_v36, %v1009_v42  ;;  %v509_v13 = vadd.f32 %v477_v4, %v409_v2  ;;  %v778_v19 = vmul.f32 %v1495_v34, %v1778_v17  ;;  %v879_v27 = vmul.f32 %v1433_v54, %v1783_v21 }
  0x3b   : > { %v910_v15 = vadd.f32 %v878_v58, %v809_v5  ;;  %v979_v53 = vmul.f32 %v1949_v14, %v1785_v22  ;;  %v410_v61 = vadd.f32 %v378_v59, %v310_v45  ;;  %v579_v63 = vmul.f32 %v1432_v40, %v1771_v12 }
  0x3c   : > { %v1141_v60 = vmax.f32 %v1853_v18, %v1109_v7  ;;  %v610_v23 = vadd.f32 %v578_v0, %v509_v13  ;;  %v1079_v26 = vmul.f32 %v1497_v28, %v1791_v25  ;;  %v279_v31 = vmul.f32 %v1431_v20, %v1755_v8 }
  0x3d   : > { %v1010_v29 = vadd.f32 %v978_v62, %v910_v15  ;;  %v379_v32 = vmul.f32 %v1910_v33, %v1757_v9  ;;  %v510_v30 = vadd.f32 %v478_v48, %v410_v61  ;;  %v679_v18 = vmul.f32 %v1928_v55, %v1776_v16 }
  0x3e   : > { %1173 = vst [vmem:[%s1900_s21 + $0x20] sm:$0xff] %v1141_v60  ;;  %v710_v37 = vadd.f32 %v678_v6, %v610_v23  ;;  %v779_v38 = vmul.f32 %v1496_v41, %v1778_v17  ;;  %v880_v49 = vmul.f32 %v1434_v39, %v1783_v21  ;;  %v311_v20 = vadd.f32 %v1767_v10, %v279_v31  ;;  %v1499_v23 = vld [vmem:[%s1762_s9 + $0x92] sm:$0xff] }
  0x3f   : > { %v1110_v43 = vadd.f32 %v1078_v24, %v1010_v29  ;;  %v479_v46 = vmul.f32 %v1495_v34, %v1769_v11  ;;  %v611_v47 = vadd.f32 %v579_v63, %v510_v30  ;;  %v980_v51 = vmul.f32 %v1971_v44, %v1785_v22 }
  0x40   : > { %v810_v36 = vadd.f32 %v778_v19, %v710_v37  ;;  %v580_v35 = vmul.f32 %v1433_v54, %v1771_v12  ;;  %v411_v4 = vadd.f32 %v379_v32, %v311_v20  ;;  %v280_v57 = vmul.f32 %v1432_v40, %v1755_v8 }
  0x41   : > { %v1142_v52 = vmax.f32 %v1876_v50, %v1110_v43  ;;  %v380_v58 = vmul.f32 %v1928_v55, %v1757_v9  ;;  %v711_v34 = vadd.f32 %v679_v18, %v611_v47  ;;  %v1080_v0 = vmul.f32 %v1498_v56, %v1791_v25  ;;  %v1992_v50 = vld [vmem:[%s1762_s9 + $0x91] sm:$0xff]  ;;  %v2021_v47 = vld [vmem:[%s1762_s9 + $0x99] sm:$0xff] }
  0x42   : > { %v911_v62 = vadd.f32 %v879_v27, %v810_v36  ;;  %v680_v1 = vmul.f32 %v1949_v14, %v1776_v16  ;;  %v511_v42 = vadd.f32 %v479_v46, %v411_v4  ;;  %v780_v2 = vmul.f32 %v1497_v28, %v1778_v17  ;;  %v1436_v18 = vld [vmem:[%s1762_s9 + $0x98] sm:$0xff] }
  0x43   : > { %1174 = vst [vmem:[%s1900_s21 + $0x28] sm:$0xff] %v1142_v52  ;;  %v312_v40 = vadd.f32 %v1767_v10, %v280_v57  ;;  %v480_v5 = vmul.f32 %v1496_v41, %v1769_v11  ;;  %v811_v6 = vadd.f32 %v779_v38, %v711_v34  ;;  %v881_v59 = vmul.f32 %v1989_v3, %v1783_v21  ;;  %v1500_v34 = vld [vmem:[%s1762_s9 + $0x9a] sm:$0xff] }
  0x44   : > { %v1011_v24 = vadd.f32 %v979_v53, %v911_v62  ;;  %v981_v7 = vmul.f32 %v1992_v50, %v1785_v22  ;;  %v612_v13 = vadd.f32 %v580_v35, %v511_v42  ;;  %v581_v48 = vmul.f32 %v1434_v39, %v1771_v12  ;;  %v1437_v42 = vld [vmem:[%s1762_s9 + $0xa8] sm:$0xff] }
  0x45   : > { %v412_v45 = vadd.f32 %v380_v58, %v312_v40  ;;  %v281_v15 = vmul.f32 %v1433_v54, %v1755_v8  ;;  %v912_v27 = vadd.f32 %v880_v49, %v811_v6  ;;  %v681_v41 = vmul.f32 %v1971_v44, %v1776_v16  ;;  %v2037_v40 = vld [vmem:[%s1762_s9 + $0xa9] sm:$0xff] }
  0x46   : > { %v1111_v19 = vadd.f32 %v1079_v26, %v1011_v24  ;;  %v381_v53 = vmul.f32 %v1949_v14, %v1757_v9  ;;  %v712_v60 = vadd.f32 %v680_v1, %v612_v13  ;;  %v481_v29 = vmul.f32 %v1497_v28, %v1769_v11  ;;  %v1501_v13 = vld [vmem:[%s1762_s9 + $0xaa] sm:$0xff] }
  0x47   : > { %v512_v61 = vadd.f32 %v480_v5, %v412_v45  ;;  %v313_v63 = vadd.f32 %v1767_v10, %v281_v15  ;;  %v1012_v54 = vadd.f32 %v980_v51, %v912_v27  ;;  %v1081_v26 = vmul.f32 %v1499_v23, %v1791_v25 }
  0x48   : > { %v1143_v31 = vmax.f32 %v1910_v33, %v1111_v19  ;;  %v781_v32 = vmul.f32 %v1498_v56, %v1778_v17  ;;  %v812_v37 = vadd.f32 %v780_v2, %v712_v60  ;;  %v582_v43 = vmul.f32 %v1989_v3, %v1771_v12 }
  0x49   : > { %v613_v30 = vadd.f32 %v581_v48, %v512_v61  ;;  %v413_v38 = vadd.f32 %v381_v53, %v313_v63  ;;  %v1112_v49 = vadd.f32 %v1080_v0, %v1012_v54  ;;  %v882_v28 = vmul.f32 %v1436_v18, %v1783_v21 }
  0x4a   : > { %1175 = vst [vmem:[%s1900_s21 + $0x30] sm:$0xff] %v1143_v31  ;;  %v682_v33 = vmul.f32 %v1992_v50, %v1776_v16  ;;  %v282_v20 = vmul.f32 %v1434_v39, %v1755_v8  ;;  %v913_v46 = vadd.f32 %v881_v59, %v812_v37  ;;  %v382_v35 = vmul.f32 %v1971_v44, %v1757_v9  ;;  %v2054_v31 = vld [vmem:[%s1762_s9 + $0xb1] sm:$0xff] }
  0x4b   : > { %v713_v36 = vadd.f32 %v681_v41, %v613_v30  ;;  %v513_v51 = vadd.f32 %v481_v29, %v413_v38  ;;  %v1144_v52 = vmax.f32 %v1928_v55, %v1112_v49  ;;  %v982_v4 = vmul.f32 %v2021_v47, %v1785_v22  ;;  %v1438_v29 = vld [vmem:[%s1762_s9 + $0xb0] sm:$0xff] }
  0x4c   : > { %v314_v57 = vadd.f32 %v1767_v10, %v282_v20  ;;  %v482_v58 = vmul.f32 %v1498_v56, %v1769_v11  ;;  %v1013_v39 = vadd.f32 %v981_v7, %v913_v46  ;;  %v782_v1 = vmul.f32 %v1499_v23, %v1778_v17 }
  0x4d   : > { %v813_v62 = vadd.f32 %v781_v32, %v713_v36  ;;  %v614_v0 = vadd.f32 %v582_v43, %v513_v51  ;;  %1176 = vst [vmem:[%s1900_s21 + $0x38] sm:$0xff] %v1144_v52  ;;  %v1082_v2 = vmul.f32 %v1500_v34, %v1791_v25  ;;  %v883_v55 = vmul.f32 %v1437_v42, %v1783_v21  ;;  %v1502_v36 = vld [vmem:[%s1762_s9 + $0xb2] sm:$0xff] }
  0x4e   : > { %v414_v5 = vadd.f32 %v382_v35, %v314_v57  ;;  %v583_v24 = vmul.f32 %v1436_v18, %v1771_v12  ;;  %v1113_v56 = vadd.f32 %v1081_v26, %v1013_v39  ;;  %v983_v7 = vmul.f32 %v2037_v40, %v1785_v22  ;;  %v1439_v35 = vld [vmem:[%s1762_s9 + $0xc0] sm:$0xff] }
  0x4f   : > { %v914_v6 = vadd.f32 %v882_v28, %v813_v62  ;;  %v714_v59 = vadd.f32 %v682_v33, %v614_v0  ;;  %v683_v48 = vmul.f32 %v2021_v47, %v1776_v16  ;;  %v283_v15 = vmul.f32 %v1989_v3, %v1755_v8  ;;  %v2078_v0 = vld [vmem:[%s1762_s9 + $0xc1] sm:$0xff] }
  0x50   : > { %v514_v45 = vadd.f32 %v482_v58, %v414_v5  ;;  %v383_v19 = vmul.f32 %v1992_v50, %v1757_v9  ;;  %v1145_v27 = vmax.f32 %v1949_v14, %v1113_v56  ;;  %v1083_v60 = vmul.f32 %v1501_v13, %v1791_v25 }
  0x51   : > { %v1014_v41 = vadd.f32 %v982_v4, %v914_v6  ;;  %v814_v53 = vadd.f32 %v782_v1, %v714_v59  ;;  %v783_v63 = vmul.f32 %v1500_v34, %v1778_v17  ;;  %v315_v54 = vadd.f32 %v1767_v10, %v283_v15  ;;  %v1503_v59 = vld [vmem:[%s1762_s9 + $0xc2] sm:$0xff] }
  0x52   : > { %v615_v61 = vadd.f32 %v583_v24, %v514_v45  ;;  %v483_v3 = vmul.f32 %v1499_v23, %v1769_v11  ;;  %1177 = vst [vmem:[%s1900_s21 + $0x40] sm:$0xff] %v1145_v27  ;;  %v884_v14 = vmul.f32 %v1438_v29, %v1783_v21  ;;  %v984_v37 = vmul.f32 %v2054_v31, %v1785_v22  ;;  %v1440_v15 = vld [vmem:[%s1762_s9 + $0xc8] sm:$0xff] }
  0x53   : > { %v1114_v26 = vadd.f32 %v1082_v2, %v1014_v41  ;;  %v915_v32 = vadd.f32 %v883_v55, %v814_v53  ;;  %v415_v38 = vadd.f32 %v383_v19, %v315_v54  ;;  %v584_v43 = vmul.f32 %v1437_v42, %v1771_v12 }
  0x54   : > { %v715_v30 = vadd.f32 %v683_v48, %v615_v61  ;;  %v284_v49 = vmul.f32 %v1436_v18, %v1755_v8  ;;  %v684_v23 = vmul.f32 %v2037_v40, %v1776_v16  ;;  %v384_v20 = vmul.f32 %v2021_v47, %v1757_v9  ;;  %v2098_v61 = vld [vmem:[%s1762_s9 + $0xc9] sm:$0xff] }
  0x55   : > { %v1146_v28 = vmax.f32 %v1971_v44, %v1114_v26  ;;  %v1015_v33 = vadd.f32 %v983_v7, %v915_v32  ;;  %v515_v51 = vadd.f32 %v483_v3, %v415_v38  ;;  %v484_v4 = vmul.f32 %v1500_v34, %v1769_v11 }
  0x56   : > { %v815_v46 = vadd.f32 %v783_v63, %v715_v30  ;;  %v316_v52 = vadd.f32 %v1767_v10, %v284_v49  ;;  %v1084_v44 = vmul.f32 %v1502_v36, %v1791_v25  ;;  %v784_v57 = vmul.f32 %v1501_v13, %v1778_v17  ;;  %v1504_v30 = vld [vmem:[%s1762_s9 + $0xca] sm:$0xff] }
  0x57   : > { %1178 = vst [vmem:[%s1900_s21 + $0x48] sm:$0xff] %v1146_v28  ;;  %v1115_v18 = vadd.f32 %v1083_v60, %v1015_v33  ;;  %v885_v58 = vmul.f32 %v1439_v35, %v1783_v21  ;;  %v616_v62 = vadd.f32 %v584_v43, %v515_v51  ;;  %v585_v2 = vmul.f32 %v1438_v29, %v1771_v12 }
  0x58   : > { %v916_v39 = vadd.f32 %v884_v14, %v815_v46  ;;  %v416_v1 = vadd.f32 %v384_v20, %v316_v52  ;;  %v985_v55 = vmul.f32 %v2078_v0, %v1785_v22  ;;  %v285_v5 = vmul.f32 %v1437_v42, %v1755_v8  ;;  %v1441_v20 = vld [vmem:[%s1762_s9 + $0xd8] sm:$0xff] }
  0x59   : > { %v1147_v34 = vmax.f32 %v1992_v50, %v1115_v18  ;;  %v385_v24 = vmul.f32 %v2037_v40, %v1757_v9  ;;  %v716_v6 = vadd.f32 %v684_v23, %v616_v62  ;;  %v685_v45 = vmul.f32 %v2054_v31, %v1776_v16  ;;  %v2118_v52 = vld [vmem:[%s1762_s9 + $0xd9] sm:$0xff] }
  0x5a   : > { %v1016_v56 = vadd.f32 %v984_v37, %v916_v39  ;;  %v516_v7 = vadd.f32 %v484_v4, %v416_v1  ;;  %v1085_v48 = vmul.f32 %v1503_v59, %v1791_v25  ;;  %v785_v50 = vmul.f32 %v1502_v36, %v1778_v17 }
  0x5b   : > { %1179 = vst [vmem:[%s1900_s21 + $0x50] sm:$0xff] %v1147_v34  ;;  %v317_v42 = vadd.f32 %v1767_v10, %v285_v5  ;;  %v485_v19 = vmul.f32 %v1501_v13, %v1769_v11  ;;  %v816_v41 = vadd.f32 %v784_v57, %v716_v6  ;;  %v886_v60 = vmul.f32 %v1440_v15, %v1783_v21  ;;  %v1505_v5 = vld [vmem:[%s1762_s9 + $0xda] sm:$0xff] }
  0x5c   : > { %v1116_v27 = vadd.f32 %v1084_v44, %v1016_v56  ;;  %v617_v53 = vadd.f32 %v585_v2, %v516_v7  ;;  %v986_v63 = vmul.f32 %v2098_v61, %v1785_v22  ;;  %v586_v3 = vmul.f32 %v1439_v35, %v1771_v12 }
  0x5d   : > { %v417_v54 = vadd.f32 %v385_v24, %v317_v42  ;;  %v286_v26 = vmul.f32 %v1438_v29, %v1755_v8  ;;  %v917_v13 = vadd.f32 %v885_v58, %v816_v41  ;;  %v386_v37 = vmul.f32 %v2054_v31, %v1757_v9 }
  0x5e   : > { %v1148_v32 = vmax.f32 %v2021_v47, %v1116_v27  ;;  %v717_v14 = vadd.f32 %v685_v45, %v617_v53  ;;  %v686_v43 = vmul.f32 %v2078_v0, %v1776_v16  ;;  %v486_v28 = vmul.f32 %v1502_v36, %v1769_v11 }
  0x5f   : > { %v517_v38 = vadd.f32 %v485_v19, %v417_v54  ;;  %v318_v49 = vadd.f32 %v1767_v10, %v286_v26  ;;  %v1017_v33 = vadd.f32 %v985_v55, %v917_v13  ;;  %v1086_v47 = vmul.f32 %v1504_v30, %v1791_v25  ;;  %v2138_v19 = vld [vmem:[%s1762_s9 + $0xe1] sm:$0xff] }
  0x60   : > { %1180 = vst [vmem:[%s1900_s21 + $0x58] sm:$0xff] %v1148_v32  ;;  %v817_v29 = vadd.f32 %v785_v50, %v717_v14  ;;  %v786_v23 = vmul.f32 %v1503_v59, %v1778_v17  ;;  %v887_v51 = vmul.f32 %v1441_v20, %v1783_v21  ;;  %v587_v18 = vmul.f32 %v1440_v15, %v1771_v12  ;;  %v1506_v14 = vld [vmem:[%s1762_s9 + $0xe2] sm:$0xff] }
  0x61   : > { %v618_v46 = vadd.f32 %v586_v3, %v517_v38  ;;  %v418_v4 = vadd.f32 %v386_v37, %v318_v49  ;;  %v1117_v44 = vadd.f32 %v1085_v48, %v1017_v33  ;;  %v987_v36 = vmul.f32 %v2118_v52, %v1785_v22  ;;  %v1442_v48 = vld [vmem:[%s1762_s9 + $0xe0] sm:$0xff]  ;;  %v1443_v33 = vld [vmem:[%s1762_s9 + $0xf0] sm:$0xff] }
  0x62   : > { %v918_v57 = vadd.f32 %v886_v60, %v817_v29  ;;  %v287_v58 = vmul.f32 %v1439_v35, %v1755_v8  ;;  %v687_v1 = vmul.f32 %v2098_v61, %v1776_v16  ;;  %v387_v2 = vmul.f32 %v2078_v0, %v1757_v9 }
  0x63   : > { %v718_v39 = vadd.f32 %v686_v43, %v618_v46  ;;  %v518_v62 = vadd.f32 %v486_v28, %v418_v4  ;;  %v1149_v34 = vmax.f32 %v2037_v40, %v1117_v44  ;;  %v487_v56 = vmul.f32 %v1503_v59, %v1769_v11  ;;  %v2163_v44 = vld [vmem:[%s1762_s9 + $0xf1] sm:$0xff] }
  0x64   : > { %v1018_v55 = vadd.f32 %v986_v63, %v918_v57  ;;  %v319_v24 = vadd.f32 %v1767_v10, %v287_v58  ;;  %v1087_v35 = vmul.f32 %v1505_v5, %v1791_v25  ;;  %v787_v45 = vmul.f32 %v1504_v30, %v1778_v17 }
  0x65   : > { %v818_v6 = vadd.f32 %v786_v23, %v718_v39  ;;  %v619_v7 = vadd.f32 %v587_v18, %v518_v62  ;;  %1181 = vst [vmem:[%s1900_s21 + $0x60] sm:$0xff] %v1149_v34  ;;  %v888_v42 = vmul.f32 %v1442_v48, %v1783_v21  ;;  %v588_v27 = vmul.f32 %v1441_v20, %v1771_v12  ;;  %v1507_v62 = vld [vmem:[%s1762_s9 + $0xf2] sm:$0xff] }
  0x66   : > { %v1118_v50 = vadd.f32 %v1086_v47, %v1018_v55  ;;  %v419_v40 = vadd.f32 %v387_v2, %v319_v24  ;;  %v988_v53 = vmul.f32 %v2138_v19, %v1785_v22  ;;  %v288_v60 = vmul.f32 %v1440_v15, %v1755_v8  ;;  %v1444_v24 = vld [vmem:[%s1762_s9 + $0xf8] sm:$0xff] }
  0x67   : > { %v919_v41 = vadd.f32 %v887_v51, %v818_v6  ;;  %v719_v59 = vadd.f32 %v687_v1, %v619_v7  ;;  %v688_v3 = vmul.f32 %v2118_v52, %v1776_v16  ;;  %v388_v26 = vmul.f32 %v2098_v61, %v1757_v9 }
  0x68   : > { %v1150_v63 = vmax.f32 %v2054_v31, %v1118_v50  ;;  %v519_v54 = vadd.f32 %v487_v56, %v419_v40  ;;  %v320_v37 = vadd.f32 %v1767_v10, %v288_v60  ;;  %v488_v38 = vmul.f32 %v1504_v30, %v1769_v11  ;;  %v2180_v50 = vld [vmem:[%s1762_s9 + $0xf9] sm:$0xff] }
  0x69   : > { %v1019_v32 = vadd.f32 %v987_v36, %v919_v41  ;;  %v819_v13 = vadd.f32 %v787_v45, %v719_v59  ;;  %v1088_v15 = vmul.f32 %v1506_v14, %v1791_v25  ;;  %v788_v31 = vmul.f32 %v1505_v5, %v1778_v17  ;;  %v1508_v59 = vld [vmem:[%s1762_s9 + $0xfa] sm:$0xff] }
  0x6a   : > { %1182 = vst [vmem:[%s1900_s21 + $0x68] sm:$0xff] %v1150_v63  ;;  %v620_v43 = vadd.f32 %v588_v27, %v519_v54  ;;  %v420_v29 = vadd.f32 %v388_v26, %v320_v37  ;;  %v589_v47 = vmul.f32 %v1442_v48, %v1771_v12  ;;  %v889_v46 = vmul.f32 %v1443_v33, %v1783_v21  ;;  %v1445_v54 = vld [vmem:[%s1762_s9 + $0x108] sm:$0xff] }
  0x6b   : > { %v1119_v49 = vadd.f32 %v1087_v35, %v1019_v32  ;;  %v920_v28 = vadd.f32 %v888_v42, %v819_v13  ;;  %v289_v30 = vmul.f32 %v1441_v20, %v1755_v8  ;;  %v389_v51 = vmul.f32 %v2118_v52, %v1757_v9 }
  0x6c   : > { %v720_v23 = vadd.f32 %v688_v3, %v620_v43  ;;  %v520_v57 = vadd.f32 %v488_v38, %v420_v29  ;;  %v689_v36 = vmul.f32 %v2138_v19, %v1776_v16  ;;  %v989_v39 = vmul.f32 %v2163_v44, %v1785_v22 }
  0x6d   : > { %v1151_v4 = vmax.f32 %v2078_v0, %v1119_v49  ;;  %v1020_v18 = vadd.f32 %v988_v53, %v920_v28  ;;  %v321_v20 = vadd.f32 %v1767_v10, %v289_v30  ;;  %v489_v1 = vmul.f32 %v1505_v5, %v1769_v11 }
  0x6e   : > { %v820_v58 = vadd.f32 %v788_v31, %v720_v23  ;;  %v1089_v0 = vmul.f32 %v1507_v62, %v1791_v25  ;;  %v621_v34 = vadd.f32 %v589_v47, %v520_v57  ;;  %v789_v55 = vmul.f32 %v1506_v14, %v1778_v17  ;;  %v2205_v23 = vld [vmem:[%s1762_s9 + $0x109] sm:$0xff] }
  0x6f   : > { %1183 = vst [vmem:[%s1900_s21 + $0x70] sm:$0xff] %v1151_v4  ;;  %v1120_v2 = vadd.f32 %v1088_v15, %v1020_v18  ;;  %v890_v6 = vmul.f32 %v1444_v24, %v1783_v21  ;;  %v421_v35 = vadd.f32 %v389_v51, %v321_v20  ;;  %v590_v7 = vmul.f32 %v1443_v33, %v1771_v12 }
  0x70   : > { %v921_v56 = vadd.f32 %v889_v46, %v820_v58  ;;  %v721_v5 = vadd.f32 %v689_v36, %v621_v34  ;;  %v290_v42 = vmul.f32 %v1442_v48, %v1755_v8  ;;  %v390_v40 = vmul.f32 %v2138_v19, %v1757_v9  ;;  %v1509_v46 = vld [vmem:[%s1762_s9 + $0x10a] sm:$0xff] }
  0x71   : > { %v1152_v45 = vmax.f32 %v2098_v61, %v1120_v2  ;;  %v990_v41 = vmul.f32 %v2180_v50, %v1785_v22  ;;  %v521_v53 = vadd.f32 %v489_v1, %v421_v35  ;;  %v690_v60 = vmul.f32 %v2163_v44, %v1776_v16 }
  0x72   : > { %v1021_v27 = vadd.f32 %v989_v39, %v921_v56  ;;  %v821_v63 = vadd.f32 %v789_v55, %v721_v5  ;;  %v1090_v61 = vmul.f32 %v1508_v59, %v1791_v25  ;;  %v322_v48 = vadd.f32 %v1767_v10, %v290_v42  ;;  %v1446_v39 = vld [vmem:[%s1762_s9 + $0x110] sm:$0xff] }
  0x73   : > { %1184 = vst [vmem:[%s1900_s21 + $0x78] sm:$0xff] %v1152_v45  ;;  %v490_v3 = vmul.f32 %v1506_v14, %v1769_v11  ;;  %v622_v32 = vadd.f32 %v590_v7, %v521_v53  ;;  %v790_v13 = vmul.f32 %v1507_v62, %v1778_v17  ;;  %v891_v37 = vmul.f32 %v1445_v54, %v1783_v21  ;;  %v1510_v42 = vld [vmem:[%s1762_s9 + $0x112] sm:$0xff] }
  0x74   : > { %v1121_v26 = vadd.f32 %v1089_v0, %v1021_v27  ;;  %v922_v38 = vadd.f32 %v890_v6, %v821_v63  ;;  %v422_v15 = vadd.f32 %v390_v40, %v322_v48  ;;  %v591_v43 = vmul.f32 %v1444_v24, %v1771_v12  ;;  %v2223_v6 = vld [vmem:[%s1762_s9 + $0x111] sm:$0xff] }
  0x75   : > { %v291_v31 = vmul.f32 %v1443_v33, %v1755_v8  ;;  %v722_v28 = vadd.f32 %v690_v60, %v622_v32  ;;  %v691_v14 = vmul.f32 %v2180_v50, %v1776_v16  ;;  %v391_v29 = vmul.f32 %v2163_v44, %v1757_v9  ;;  %v1447_v60 = vld [vmem:[%s1762_s9 + $0x120] sm:$0xff] }
  0x76   : > { %v1153_v49 = vmax.f32 %v2118_v52, %v1121_v26  ;;  %v1022_v47 = vadd.f32 %v990_v41, %v922_v38  ;;  %v522_v30 = vadd.f32 %v490_v3, %v422_v15  ;;  %v491_v4 = vmul.f32 %v1507_v62, %v1769_v11 }
  0x77   : > { %v323_v51 = vadd.f32 %v1767_v10, %v291_v31  ;;  %v822_v52 = vadd.f32 %v790_v13, %v722_v28  ;;  %v991_v33 = vmul.f32 %v2205_v23, %v1785_v22  ;;  %v1091_v18 = vmul.f32 %v1509_v46, %v1791_v25 }
  0x78   : > { %1185 = vst [vmem:[%s1900_s21 + $0x80] sm:$0xff] %v1153_v49  ;;  %v791_v57 = vmul.f32 %v1508_v59, %v1778_v17  ;;  %v1122_v36 = vadd.f32 %v1090_v61, %v1022_v47  ;;  %v623_v58 = vadd.f32 %v591_v43, %v522_v30  ;;  %v592_v1 = vmul.f32 %v1445_v54, %v1771_v12 }
  0x79   : > { %v423_v20 = vadd.f32 %v391_v29, %v323_v51  ;;  %v923_v2 = vadd.f32 %v891_v37, %v822_v52  ;;  %v892_v62 = vmul.f32 %v1446_v39, %v1783_v21  ;;  %v292_v0 = vmul.f32 %v1444_v24, %v1755_v8  ;;  %v1448_v29 = vld [vmem:[%s1762_s9 + $0x128] sm:$0xff] }
  0x7a   : > { %v392_v34 = vmul.f32 %v2180_v50, %v1757_v9  ;;  %v1154_v55 = vmax.f32 %v2138_v19, %v1122_v36  ;;  %v723_v56 = vadd.f32 %v691_v14, %v623_v58  ;;  %v692_v7 = vmul.f32 %v2205_v23, %v1776_v16  ;;  %v1511_v14 = vld [vmem:[%s1762_s9 + $0x122] sm:$0xff] }
  0x7b   : > { %v523_v35 = vadd.f32 %v491_v4, %v423_v20  ;;  %v1023_v45 = vadd.f32 %v991_v33, %v923_v2  ;;  %v992_v5 = vmul.f32 %v2223_v6, %v1785_v22  ;;  %v324_v24 = vadd.f32 %v1767_v10, %v292_v0 }
  0x7c   : > { %v492_v40 = vmul.f32 %v1508_v59, %v1769_v11  ;;  %1186 = vst [vmem:[%s1900_s21 + $0x88] sm:$0xff] %v1154_v55  ;;  %v823_v27 = vadd.f32 %v791_v57, %v723_v56  ;;  %v1092_v19 = vmul.f32 %v1510_v42, %v1791_v25  ;;  %v792_v53 = vmul.f32 %v1509_v46, %v1778_v17  ;;  %v2239_v59 = vld [vmem:[%s1762_s9 + $0x121] sm:$0xff] }
  0x7d   : > { %v624_v41 = vadd.f32 %v592_v1, %v523_v35  ;;  %v1123_v63 = vadd.f32 %v1091_v18, %v1023_v45  ;;  %v893_v61 = vmul.f32 %v1447_v60, %v1783_v21  ;;  %v424_v48 = vadd.f32 %v392_v34, %v324_v24  ;;  %v2258_v18 = vld [vmem:[%s1762_s9 + $0x129] sm:$0xff]  ;;  %v1449_v35 = vld [vmem:[%s1762_s9 + $0x138] sm:$0xff] }
  0x7e   : > { %v593_v3 = vmul.f32 %v1446_v39, %v1771_v12  ;;  %v924_v26 = vadd.f32 %v892_v62, %v823_v27  ;;  %v293_v13 = vmul.f32 %v1445_v54, %v1755_v8  ;;  %v393_v37 = vmul.f32 %v2205_v23, %v1757_v9  ;;  %v1512_v62 = vld [vmem:[%s1762_s9 + $0x12a] sm:$0xff] }
  0x7f   : > { %v724_v32 = vadd.f32 %v692_v7, %v624_v41  ;;  %v1155_v38 = vmax.f32 %v2163_v44, %v1123_v63  ;;  %v993_v15 = vmul.f32 %v2239_v59, %v1785_v22  ;;  %v524_v43 = vadd.f32 %v492_v40, %v424_v48  ;;  %v2275_v7 = vld [vmem:[%s2517_s2] ss:$0 sm:$0xff] }
  0x80   : > { %v693_v31 = vmul.f32 %v2223_v6, %v1776_v16  ;;  %v1024_v49 = vadd.f32 %v992_v5, %v924_v26  ;;  %v325_v47 = vadd.f32 %v1767_v10, %v293_v13  ;;  %v493_v54 = vmul.f32 %v1509_v46, %v1769_v11  ;;  %v2290_v26 = vld [vmem:[%s1762_s9 + $0x139] sm:$0xff] }
  0x81   : > { %v824_v28 = vadd.f32 %v792_v53, %v724_v32  ;;  %1187 = vst [vmem:[%s1900_s21 + $0x90] sm:$0xff] %v1155_v38  ;;  %v1093_v44 = vmul.f32 %v1511_v14, %v1791_v25  ;;  %v625_v30 = vadd.f32 %v593_v3, %v524_v43  ;;  %v793_v51 = vmul.f32 %v1510_v42, %v1778_v17  ;;  %v1513_v32 = vld [vmem:[%s1762_s9 + $0x13a] sm:$0xff] }
  0x82   : > { %v894_v4 = vmul.f32 %v1448_v29, %v1783_v21  ;;  %v1124_v52 = vadd.f32 %v1092_v19, %v1024_v49  ;;  %v425_v57 = vadd.f32 %v393_v37, %v325_v47  ;;  %v594_v36 = vmul.f32 %v1447_v60, %v1771_v12 }
  0x83   : > { %v925_v33 = vadd.f32 %v893_v61, %v824_v28  ;;  %v725_v10 = vadd.f32 %v693_v31, %v625_v30  ;;  %v994_v46 = vmul.f32 %v2258_v18, %v1785_v22  ;;  %v294_v58 = vmul.f32 %v1446_v39, %v1755_v8  ;;  %v1450_v28 = vld [vmem:[%s1762_s9 + $0x140] sm:$0xff] }
  0x84   : > { %v394_v20 = vmul.f32 %v2223_v6, %v1757_v9  ;;  %v1156_v1 = vmax.f32 %v2180_v50, %v1124_v52  ;;  %v525_v0 = vadd.f32 %v493_v54, %v425_v57  ;;  %v694_v34 = vmul.f32 %v2239_v59, %v1776_v16 }
  0x85   : > { %v1025_v2 = vadd.f32 %v993_v15, %v925_v33  ;;  %v825_v55 = vadd.f32 %v793_v51, %v725_v10  ;;  %v1094_v56 = vmul.f32 %v1512_v62, %v1791_v25  ;;  %v326_v39 = vadd.f32 %v2275_v7, %v294_v58  ;;  %v2308_v33 = vld [vmem:[%s1762_s9 + $0x141] sm:$0xff] }
  0x86   : > { %v494_v50 = vmul.f32 %v1510_v42, %v1769_v11  ;;  %1188 = vst [vmem:[%s1900_s21 + $0x98] sm:$0xff] %v1156_v1  ;;  %v626_v5 = vadd.f32 %v594_v36, %v525_v0  ;;  %v794_v24 = vmul.f32 %v1511_v14, %v1778_v17  ;;  %v895_v40 = vmul.f32 %v1449_v35, %v1783_v21  ;;  %v1514_v58 = vld [vmem:[%s1762_s9 + $0x142] sm:$0xff] }
  0x87   : > { %v1125_v45 = vadd.f32 %v1093_v44, %v1025_v2  ;;  %v926_v27 = vadd.f32 %v894_v4, %v825_v55  ;;  %v426_v19 = vadd.f32 %v394_v20, %v326_v39  ;;  %v595_v41 = vmul.f32 %v1448_v29, %v1771_v12 }
  0x88   : > { %v295_v53 = vmul.f32 %v1447_v60, %v1755_v8  ;;  %v726_v61 = vadd.f32 %v694_v34, %v626_v5  ;;  %v695_v42 = vmul.f32 %v2258_v18, %v1776_v16  ;;  %v395_v48 = vmul.f32 %v2239_v59, %v1757_v9  ;;  %v1451_v34 = vld [vmem:[%s1762_s9 + $0x150] sm:$0xff] }
  0x89   : > { %v1157_v63 = vmax.f32 %v2205_v23, %v1125_v45  ;;  %v1026_v3 = vadd.f32 %v994_v46, %v926_v27  ;;  %v526_v13 = vadd.f32 %v494_v50, %v426_v19  ;;  %v495_v38 = vmul.f32 %v1511_v14, %v1769_v11 }
  0x8a   : > { %v327_v37 = vadd.f32 %v2275_v7, %v295_v53  ;;  %v826_v23 = vadd.f32 %v794_v24, %v726_v61  ;;  %v995_v60 = vmul.f32 %v2290_v26, %v1785_v22  ;;  %v1095_v15 = vmul.f32 %v1513_v32, %v1791_v25 }
  0x8b   : > { %1189 = vst [vmem:[%s1900_s21 + $0xa0] sm:$0xff] %v1157_v63  ;;  %v795_v43 = vmul.f32 %v1512_v62, %v1778_v17  ;;  %v1126_v31 = vadd.f32 %v1094_v56, %v1026_v3  ;;  %v627_v49 = vadd.f32 %v595_v41, %v526_v13  ;;  %v596_v54 = vmul.f32 %v1449_v35, %v1771_v12 }
  0x8c   : > { %v427_v47 = vadd.f32 %v395_v48, %v327_v37  ;;  %v927_v44 = vadd.f32 %v895_v40, %v826_v23  ;;  %v896_v14 = vmul.f32 %v1450_v28, %v1783_v21  ;;  %v296_v30 = vmul.f32 %v1448_v29, %v1755_v8  ;;  %v1452_v48 = vld [vmem:[%s1762_s9 + $0x158] sm:$0xff] }
  0x8d   : > { %v396_v51 = vmul.f32 %v2258_v18, %v1757_v9  ;;  %v1158_v4 = vmax.f32 %v2223_v6, %v1126_v31  ;;  %v727_v52 = vadd.f32 %v695_v42, %v627_v49  ;;  %v696_v36 = vmul.f32 %v2290_v26, %v1776_v16  ;;  %v1515_v42 = vld [vmem:[%s1762_s9 + $0x152] sm:$0xff] }
  0x8e   : > { %v527_v57 = vadd.f32 %v495_v38, %v427_v47  ;;  %v1027_v10 = vadd.f32 %v995_v60, %v927_v44  ;;  %v996_v46 = vmul.f32 %v2308_v33, %v1785_v22  ;;  %v328_v29 = vadd.f32 %v2275_v7, %v296_v30  ;;  %v1516_v30 = vld [vmem:[%s1762_s9 + $0x15a] sm:$0xff] }
  0x8f   : > { %v496_v20 = vmul.f32 %v1512_v62, %v1769_v11  ;;  %1190 = vst [vmem:[%s1900_s21 + $0xa8] sm:$0xff] %v1158_v4  ;;  %v827_v1 = vadd.f32 %v795_v43, %v727_v52  ;;  %v1096_v6 = vmul.f32 %v1514_v58, %v1791_v25  ;;  %v796_v0 = vmul.f32 %v1513_v32, %v1778_v17  ;;  %v2324_v62 = vld [vmem:[%s1762_s9 + $0x151] sm:$0xff] }
  0x90   : > { %v628_v2 = vadd.f32 %v596_v54, %v527_v57  ;;  %v1127_v55 = vadd.f32 %v1095_v15, %v1027_v10  ;;  %v897_v56 = vmul.f32 %v1451_v34, %v1783_v21  ;;  %v428_v39 = vadd.f32 %v396_v51, %v328_v29  ;;  %v2343_v15 = vld [vmem:[%s1762_s9 + $0x159] sm:$0xff] }
  0x91   : > { %v597_v50 = vmul.f32 %v1450_v28, %v1771_v12  ;;  %v928_v45 = vadd.f32 %v896_v14, %v827_v1  ;;  %v297_v24 = vmul.f32 %v1449_v35, %v1755_v8  ;;  %v397_v40 = vmul.f32 %v2290_v26, %v1757_v9 }
  0x92   : > { %v728_v5 = vadd.f32 %v696_v36, %v628_v2  ;;  %v1159_v27 = vmax.f32 %v2239_v59, %v1127_v55  ;;  %v997_v19 = vmul.f32 %v2324_v62, %v1785_v22  ;;  %v528_v41 = vadd.f32 %v496_v20, %v428_v39  ;;  %v1453_v36 = vld [vmem:[%s1762_s9 + $0x168] sm:$0xff] }
  0x93   : > { %v697_v53 = vmul.f32 %v2308_v33, %v1776_v16  ;;  %v1028_v63 = vadd.f32 %v996_v46, %v928_v45  ;;  %v329_v3 = vadd.f32 %v2275_v7, %v297_v24  ;;  %v497_v35 = vmul.f32 %v1513_v32, %v1769_v11  ;;  %v2370_v45 = vld [vmem:[%s1762_s9 + $0x169] sm:$0xff] }
  0x94   : > { %v828_v61 = vadd.f32 %v796_v0, %v728_v5  ;;  %1191 = vst [vmem:[%s1900_s21 + $0xb0] sm:$0xff] %v1159_v27  ;;  %v1097_v59 = vmul.f32 %v1515_v42, %v1791_v25  ;;  %v629_v13 = vadd.f32 %v597_v50, %v528_v41  ;;  %v797_v37 = vmul.f32 %v1514_v58, %v1778_v17  ;;  %v1517_v5 = vld [vmem:[%s1762_s9 + $0x16a] sm:$0xff] }
  0x95   : > { %v898_v38 = vmul.f32 %v1452_v48, %v1783_v21  ;;  %v1128_v23 = vadd.f32 %v1096_v6, %v1028_v63  ;;  %v429_v43 = vadd.f32 %v397_v40, %v329_v3  ;;  %v598_v31 = vmul.f32 %v1451_v34, %v1771_v12 }
  0x96   : > { %v929_v60 = vadd.f32 %v897_v56, %v828_v61  ;;  %v729_v49 = vadd.f32 %v697_v53, %v629_v13  ;;  %v998_v32 = vmul.f32 %v2343_v15, %v1785_v22  ;;  %v298_v47 = vmul.f32 %v1450_v28, %v1755_v8  ;;  %v1454_v61 = vld [vmem:[%s1762_s9 + $0x170] sm:$0xff] }
  0x97   : > { %v398_v54 = vmul.f32 %v2308_v33, %v1757_v9  ;;  %v1160_v44 = vmax.f32 %v2258_v18, %v1128_v23  ;;  %v529_v51 = vadd.f32 %v497_v35, %v429_v43  ;;  %v698_v4 = vmul.f32 %v2324_v62, %v1776_v16 }
  0x98   : > { %v1029_v14 = vadd.f32 %v997_v19, %v929_v60  ;;  %v829_v52 = vadd.f32 %v797_v37, %v729_v49  ;;  %v1098_v57 = vmul.f32 %v1516_v30, %v1791_v25  ;;  %v330_v10 = vadd.f32 %v2275_v7, %v298_v47  ;;  %v2388_v60 = vld [vmem:[%s1762_s9 + $0x171] sm:$0xff] }
  0x99   : > { %v498_v28 = vmul.f32 %v1514_v58, %v1769_v11  ;;  %1192 = vst [vmem:[%s1900_s21 + $0xb8] sm:$0xff] %v1160_v44  ;;  %v630_v29 = vadd.f32 %v598_v31, %v529_v51  ;;  %v798_v18 = vmul.f32 %v1515_v42, %v1778_v17  ;;  %v899_v20 = vmul.f32 %v1453_v36, %v1783_v21  ;;  %v1518_v47 = vld [vmem:[%s1762_s9 + $0x172] sm:$0xff] }
  0x9a   : > { %v1129_v46 = vadd.f32 %v1097_v59, %v1029_v14  ;;  %v930_v1 = vadd.f32 %v898_v38, %v829_v52  ;;  %v430_v6 = vadd.f32 %v398_v54, %v330_v10  ;;  %v599_v2 = vmul.f32 %v1452_v48, %v1771_v12 }
  0x9b   : > { %v299_v0 = vmul.f32 %v1451_v34, %v1755_v8  ;;  %v730_v56 = vadd.f32 %v698_v4, %v630_v29  ;;  %v699_v58 = vmul.f32 %v2343_v15, %v1776_v16  ;;  %v399_v39 = vmul.f32 %v2324_v62, %v1757_v9  ;;  %v1455_v4 = vld [vmem:[%s1762_s9 + $0x180] sm:$0xff] }
  0x9c   : > { %v1161_v55 = vmax.f32 %v2290_v26, %v1129_v46  ;;  %v1030_v50 = vadd.f32 %v998_v32, %v930_v1  ;;  %v530_v24 = vadd.f32 %v498_v28, %v430_v6  ;;  %v499_v27 = vmul.f32 %v1515_v42, %v1769_v11 }
  0x9d   : > { %v331_v40 = vadd.f32 %v2275_v7, %v299_v0  ;;  %v830_v26 = vadd.f32 %v798_v18, %v730_v56  ;;  %v999_v34 = vmul.f32 %v2370_v45, %v1785_v22  ;;  %v1099_v19 = vmul.f32 %v1517_v5, %v1791_v25  ;;  %v2404_v18 = vld [vmem:[%s1762_s9 + $0x181] sm:$0xff] }
  0x9e   : > { %1193 = vst [vmem:[%s1900_s21 + $0xc0] sm:$0xff] %v1161_v55  ;;  %v799_v41 = vmul.f32 %v1516_v30, %v1778_v17  ;;  %v1130_v53 = vadd.f32 %v1098_v57, %v1030_v50  ;;  %v631_v63 = vadd.f32 %v599_v2, %v530_v24  ;;  %v600_v35 = vmul.f32 %v1453_v36, %v1771_v12 }
  0x9f   : > { %v431_v3 = vadd.f32 %v399_v39, %v331_v40  ;;  %v931_v59 = vadd.f32 %v899_v20, %v830_v26  ;;  %v900_v42 = vmul.f32 %v1454_v61, %v1783_v21  ;;  %v300_v13 = vmul.f32 %v1452_v48, %v1755_v8  ;;  %v1456_v26 = vld [vmem:[%s1762_s9 + $0x188] sm:$0xff] }
  0xa0   : > { %v400_v37 = vmul.f32 %v2343_v15, %v1757_v9  ;;  %v1162_v38 = vmax.f32 %v2308_v33, %v1130_v53  ;;  %v731_v23 = vadd.f32 %v699_v58, %v631_v63  ;;  %v700_v31 = vmul.f32 %v2370_v45, %v1776_v16  ;;  %v1519_v58 = vld [vmem:[%s1762_s9 + $0x182] sm:$0xff] }
  0xa1   : > { %v531_v43 = vadd.f32 %v499_v27, %v431_v3  ;;  %v1031_v49 = vadd.f32 %v999_v34, %v931_v59  ;;  %v1000_v32 = vmul.f32 %v2388_v60, %v1785_v22  ;;  %v332_v48 = vadd.f32 %v2275_v7, %v300_v13  ;;  %v1488_v59 = vld [vmem:[%s1762_s9 + $0x189] sm:$0xff] }
  0xa2   : > { %v500_v54 = vmul.f32 %v1516_v30, %v1769_v11  ;;  %1194 = vst [vmem:[%s1900_s21 + $0xc8] sm:$0xff] %v1162_v38  ;;  %v831_v44 = vadd.f32 %v799_v41, %v731_v23  ;;  %v1100_v33 = vmul.f32 %v1518_v47, %v1791_v25  ;;  %v800_v51 = vmul.f32 %v1517_v5, %v1778_v17  ;;  %v1457_v23 = vld [vmem:[%s1762_s9 + $0x198] sm:$0xff] }
  0xa3   : > { %v632_v14 = vadd.f32 %v600_v35, %v531_v43  ;;  %v1131_v52 = vadd.f32 %v1099_v19, %v1031_v49  ;;  %v901_v57 = vmul.f32 %v1455_v4, %v1783_v21  ;;  %v432_v10 = vadd.f32 %v400_v37, %v332_v48  ;;  %v1489_v48 = vld [vmem:[%s1762_s9 + $0x199] sm:$0xff] }
  0xa4   : > { %v601_v28 = vmul.f32 %v1454_v61, %v1771_v12  ;;  %v932_v46 = vadd.f32 %v900_v42, %v831_v44  ;;  %v301_v30 = vmul.f32 %v1453_v36, %v1755_v8  ;;  %v401_v20 = vmul.f32 %v2370_v45, %v1757_v9 }
  0xa5   : > { %v732_v29 = vadd.f32 %v700_v31, %v632_v14  ;;  %v1163_v1 = vmax.f32 %v2324_v62, %v1131_v52  ;;  %v1001_v6 = vmul.f32 %v2404_v18, %v1785_v22  ;;  %v532_v2 = vadd.f32 %v500_v54, %v432_v10  ;;  %v1521_v14 = vld [vmem:[%s1762_s9 + $0x19a] sm:$0xff] }
  0xa6   : > { %v701_v0 = vmul.f32 %v2388_v60, %v1776_v16  ;;  %v1032_v55 = vadd.f32 %v1000_v32, %v932_v46  ;;  %v333_v39 = vadd.f32 %v2275_v7, %v301_v30  ;;  %v501_v36 = vmul.f32 %v1517_v5, %v1769_v11  ;;  %v1458_v10 = vld [vmem:[%s1762_s9 + $0x1a0] sm:$0xff] }
  0xa7   : > { %v832_v56 = vadd.f32 %v800_v51, %v732_v29  ;;  %1195 = vst [vmem:[%s1900_s21 + $0xd0] sm:$0xff] %v1163_v1  ;;  %v1101_v50 = vmul.f32 %v1519_v58, %v1791_v25  ;;  %v633_v24 = vadd.f32 %v601_v28, %v532_v2  ;;  %v801_v62 = vmul.f32 %v1518_v47, %v1778_v17  ;;  %v1490_v30 = vld [vmem:[%s1762_s9 + $0x1a1] sm:$0xff] }
  0xa8   : > { %v1132_v40 = vadd.f32 %v1100_v33, %v1032_v55  ;;  %v433_v34 = vadd.f32 %v401_v20, %v333_v39  ;;  %v602_v19 = vmul.f32 %v1455_v4, %v1771_v12  ;;  %v902_v53 = vmul.f32 %v1456_v26, %v1783_v21  ;;  %v1522_v2 = vld [vmem:[%s1762_s9 + $0x1a2] sm:$0xff] }
  0xa9   : > { %v933_v27 = vadd.f32 %v901_v57, %v832_v56  ;;  %v733_v41 = vadd.f32 %v701_v0, %v633_v24  ;;  %v302_v5 = vmul.f32 %v1454_v61, %v1755_v8  ;;  %v402_v63 = vmul.f32 %v2388_v60, %v1757_v9 }
  0xaa   : > { %v1164_v3 = vmax.f32 %v2343_v15, %v1132_v40  ;;  %v533_v42 = vadd.f32 %v501_v36, %v433_v34  ;;  %v702_v13 = vmul.f32 %v2404_v18, %v1776_v16  ;;  %v1002_v38 = vmul.f32 %v1488_v59, %v1785_v22  ;;  %v1520_v15 = vld [vmem:[%s1762_s9 + $0x18a] sm:$0xff] }
  0xab   : > { %v1033_v35 = vadd.f32 %v1001_v6, %v933_v27  ;;  %v833_v37 = vadd.f32 %v801_v62, %v733_v41  ;;  %v334_v43 = vadd.f32 %v2275_v7, %v302_v5  ;;  %v502_v8 = vmul.f32 %v1518_v47, %v1769_v11 }
  0xac   : > { %1196 = vst [vmem:[%s1900_s21 + $0xd8] sm:$0xff] %v1164_v3  ;;  %v634_v61 = vadd.f32 %v602_v19, %v533_v42  ;;  %v802_v31 = vmul.f32 %v1519_v58, %v1778_v17  ;;  %v1102_v32 = vmul.f32 %v1520_v15, %v1791_v25  ;;  %v603_v44 = vmul.f32 %v1456_v26, %v1771_v12 }
  0xad   : > { %v1133_v9 = vadd.f32 %v1101_v50, %v1033_v35  ;;  %v934_v49 = vadd.f32 %v902_v53, %v833_v37  ;;  %v434_v54 = vadd.f32 %v402_v63, %v334_v43  ;;  %v903_v11 = vmul.f32 %v1457_v23, %v1783_v21 }
  0xae   : > { %v734_v33 = vadd.f32 %v702_v13, %v634_v61  ;;  %v703_v4 = vmul.f32 %v1488_v59, %v1776_v16  ;;  %v1003_v57 = vmul.f32 %v1489_v48, %v1785_v22  ;;  %v1103_v29 = vmul.f32 %v1521_v14, %v1791_v25 }
  0xaf   : > { %v1165_v7 = vmax.f32 %v2370_v45, %v1133_v9  ;;  %v1034_v47 = vadd.f32 %v1002_v38, %v934_v49  ;;  %v534_v51 = vadd.f32 %v502_v8, %v434_v54  ;;  %v803_v45 = vmul.f32 %v1520_v15, %v1778_v17 }
  0xb0   : > { %v834_v52 = vadd.f32 %v802_v31, %v734_v33  ;;  %v904_v1 = vmul.f32 %v1458_v10, %v1783_v21  ;;  %v1004_v17 = vmul.f32 %v1490_v30, %v1785_v22  ;;  %v1104_v58 = vmul.f32 %v1522_v2, %v1791_v25 }
  0xb1   : > { %1197 = vst [vmem:[%s1900_s21 + $0xe0] sm:$0xff] %v1165_v7  ;;  %v1134_v28 = vadd.f32 %v1102_v32, %v1034_v47  ;;  %v635_v12 = vadd.f32 %v603_v44, %v534_v51 }
  0xb2   : > { %v935_v46 = vadd.f32 %v903_v11, %v834_v52 }
  0xb3   : > { %v1166_v20 = vmax.f32 %v2388_v60, %v1134_v28  ;;  %v735_v16 = vadd.f32 %v703_v4, %v635_v12 }
  0xb4   : > { %v1035_v6 = vadd.f32 %v1003_v57, %v935_v46 }
  0xb5   : > { %1198 = vst [vmem:[%s1900_s21 + $0xe8] sm:$0xff] %v1166_v20  ;;  %v835_v0 = vadd.f32 %v803_v45, %v735_v16 }
  0xb6   : > { %v1135_v55 = vadd.f32 %v1103_v29, %v1035_v6 }
  0xb7   : > { %v936_v56 = vadd.f32 %v904_v1, %v835_v0 }
  0xb8   : > { %v1167_v39 = vmax.f32 %v2404_v18, %v1135_v55 }
  0xb9   : > { %v1036_v36 = vadd.f32 %v1004_v17, %v936_v56 }
  0xba   : > { %1199 = vst [vmem:[%s1900_s21 + $0xf0] sm:$0xff] %v1167_v39 }
  0xbb   : > { %v1136_v21 = vadd.f32 %v1104_v58, %v1036_v36 }
  0xbd   : > { %v1168_v22 = vmax.f32 %v1488_v59, %v1136_v21 }
  0xbf   : > { %1200 = vst [vmem:[%s1900_s21 + $0xf8] sm:$0xff] %v1168_v22 }
  0xc0   : > { %1601 = shalt.err (!%p1598_p5)
}
  0xc1   : > { %s1602_s9 = scalar_lea.hbm %s2463_s4, 4096  ;;  %s1606_s18 = scalar_lea.hbm %s2518_s3, 8192 }
  0xc2   : > { %p1603_p6 = scmp.ne.s32.totalorder %s2463_s4, %s1602_s9  ;;  %p1607_p10 = scmp.lt.s32.totalorder %s2463_s4, %s2518_s3 }
  0xc3   : > { %p1608_p11 = scmp.lt.s32.totalorder %s1606_s18, %s1602_s9 }
  0xc4   : > { %p1604_p7 = pnand %p1603_p6, %p1729_p4 }
  0xc5   : > { %p1609_p12 = por %p1608_p11, %p1607_p10 }
  0xc6   : > { %p1605_p9 = pneg %p1604_p7 }
  0xc8   : > { %p1610_p13 = pnand %p1609_p12, %p1605_p9 }
  0xca   : > { %1613 = shalt.err (!%p1610_p13)
}
  0xcb   : > { %s1667_s23 = smov 128   ;;  %s1668_s26 = smov 8  }
  0xcc   : > { %1530 = dma.vmem_to_hbm [thread:$0]  (%p1729_p4), %s2465_s28, 4096, %s2463_s4, %s2470_s5, %s1667_s23, %s1667_s23, %s1668_s26  }
  0xcd PF: > { %p1536_p0 = scmp.ge.s32.totalorder %s1664_s17, 2  ;;  %s1231_s27 = sand.u32 1, %s1644_s12  }
  0xce   : > { %s1232_s29 = scalar_lea.sflag [#allocation3], %s1231_s27 }
  0xcf   : > { %p1533_p1 = pnand %p1536_p0, %p1736_p8 }
  0xd1   : > { %p1534_p2 = pneg %p1533_p1 }
  0xd3   : > { %1639 = dma.done.wait (%p1534_p2), %s1232_s29, 4096  }
  0xd4   : > { %1641 = vsyncadd (%p1534_p2), %s1232_s29, 4294963200  ;;  %s16_s17 = sadd.s32 1, %s1664_s17   ;;  %s2521_s12 = smov %s1648_s13 }
  0xd5   : > { %p13_p3 = scmp.ge.s32.totalorder %s16_s17, 4   ;;  %s2522_s13 = smov %s1652_s14 }
  0xd6   : > { %s2523_s14 = smov %s1742_s25  ;;  %s2524_s15 = smov %s1660_s16 }
  0xd7   : > { %s2525_s16 = smov %s2527_s20  ;;  %15 = sbr.rel (!%p13_p3) target bundleno = 4 (0x4), region = 75 }
  0xdc   :  { %1237 = vsyncpa [#allocation3], 1 }
  0xdd   :  { %1239 = vsyncpa [#allocation3 + $0x1], 1 }

</bundles_post_ra>
